<compile_context>
chip_gen: v6e
topology: v6e:2x2x1
jax: 0.10.0
libtpu: 0.0.40
codegen_flags: <defaults>
</compile_context>

<pallas_src>
import functools

import numpy as np
import jax
import jax.numpy as jnp
from jax.experimental import pallas as pl
from jax.experimental.pallas import tpu as pltpu

N_DIM = 32
LANES = 128
DEFAULT_TILE_ROWS = 4096  # rows of 128 lanes per grid step (512K elements, ~8 MiB VMEM dbl-buffered)
CHUNK_ROWS = 64           # rows per inner register-resident chunk (8 vregs)


def _round_up(x, m):
    return ((x + m - 1) // m) * m


def _norm2uc_kernel(params_ref, norm_ref, out_ref, *, n_terms, chunk):
    # params_ref: SMEM f32[2 + 2*n_terms] = [c0, c1, bj'(n_terms), wj'(n_terms)]
    # norm_ref / out_ref: VMEM f32[(tile_rows, 128)]
    c0 = params_ref[0]
    c1 = params_ref[1]
    bj = [params_ref[2 + j] for j in range(n_terms)]
    wj = [params_ref[2 + n_terms + j] for j in range(n_terms)]

    tile_rows = norm_ref.shape[0]
    num_chunks = tile_rows // chunk

    def body(ci, carry):
        r0 = pl.multiple_of(ci * chunk, 8)
        # m = clamp(norm, -4, 4); the 0.1 pre-scale is folded into c1 / wj' / bj'.
        m = jnp.clip(norm_ref[pl.ds(r0, chunk), :], -4.0, 4.0)
        acc = c0 + c1 * m
        # 4 VALU ops per term per element (add, sign-clear abs, mul, add).
        for j in range(n_terms):
            acc = acc + wj[j] * jnp.abs(m + bj[j])
        out_ref[pl.ds(r0, chunk), :] = acc
        return carry

    if num_chunks == 1:
        body(jnp.int32(0), 0)
    else:
        # unroll=2: lets the scheduler overlap next-chunk vld / prev-chunk vst
        # with the tail of the accumulate chain.
        jax.lax.fori_loop(0, num_chunks, body, 0, unroll=2)


def _fold_params_host(b, w, n_dim):
    """Exact host-side refactor + linear-term folding (numpy f32)."""
    s = np.float32(n_dim ** -0.5)
    wj = (np.float32(0.45) * s * np.float32(0.1) * w).astype(np.float32)
    bj = (np.float32(10.0) * b).astype(np.float32)
    c0 = np.float32(np.float32(0.55) * s * np.sum(w * b, dtype=np.float32))
    c1 = np.float32(np.float32(0.55) * s * np.float32(0.1) * np.sum(w, dtype=np.float32))
    # Terms with |bj'| >= 4 never change sign over m in [-4, 4] -> exactly linear.
    pos = bj >= np.float32(4.0)
    neg = bj <= np.float32(-4.0)
    mid = ~(pos | neg)
    sgn = pos.astype(np.float32) - neg.astype(np.float32)
    c0 = np.float32(c0 + np.sum(sgn * wj * bj, dtype=np.float32))
    c1 = np.float32(c1 + np.sum(sgn * wj, dtype=np.float32))
    return c0, c1, bj[mid], wj[mid]


def norm2uc_forward(norm, uc_k_bias, uc_kout_weight, *, n_dim=N_DIM,
                    tile_rows=DEFAULT_TILE_ROWS, fold_linear_terms=True):
    """norm: (N,) float32 -> (N,) float32, matching Norm2UC.forward (inference)."""
    N = norm.shape[0]
    norm32 = norm.astype(jnp.float32)

    # ---- parameter folding (host side when concrete, generic path otherwise) ----
    if fold_linear_terms:
        try:
            b_np = np.asarray(jax.device_get(uc_k_bias), dtype=np.float32).reshape(n_dim)
            w_np = np.asarray(jax.device_get(uc_kout_weight), dtype=np.float32).reshape(n_dim)
        except (jax.errors.ConcretizationTypeError, TypeError):
            fold_linear_terms = False  # traced params (jit/vmap over weights): no folding

    if fold_linear_terms:
        c0, c1, bj_np, wj_np = _fold_params_host(b_np, w_np, n_dim)
        n_terms = int(bj_np.shape[0])
        params = jnp.asarray(
            np.concatenate([np.asarray([c0, c1], dtype=np.float32), bj_np, wj_np])
            .astype(np.float32))
    else:
        b32 = jnp.asarray(uc_k_bias, jnp.float32).reshape(n_dim)
        w32 = jnp.asarray(uc_kout_weight, jnp.float32).reshape(n_dim)
        s = jnp.float32(n_dim ** -0.5)
        c0 = 0.55 * s * jnp.sum(w32 * b32)
        c1 = 0.55 * s * 0.1 * jnp.sum(w32)
        wj = 0.45 * s * 0.1 * w32
        bj = 10.0 * b32
        n_terms = n_dim
        params = jnp.concatenate([jnp.stack([c0, c1]), bj, wj]).astype(jnp.float32)

    # ---- lane-dense 2-D layout with minimal padding (multiple of 8*128 only) ----
    rows = pl.cdiv(N, LANES)
    rows8 = _round_up(rows, 8)
    Np = rows8 * LANES
    if Np != N:
        # One extra HBM round trip for non-aligned N (plus the tail slice below).
        # Callers that keep N a multiple of 1024 pay zero wrapper copies.
        norm32 = jnp.pad(norm32, (0, Np - N))
    norm2d = norm32.reshape(rows8, LANES)

    # ---- tile selection: big tiles, but always >= 2 grid steps when possible ----
    if rows8 >= 2 * CHUNK_ROWS:
        half = _round_up(pl.cdiv(rows8, 2), CHUNK_ROWS)      # >=2 steps -> both v7x TCs busy
        tile_r = min(_round_up(int(tile_rows), CHUNK_ROWS), half)
        chunk = CHUNK_ROWS
    elif rows8 >= 16:
        tile_r = _round_up(pl.cdiv(rows8, 2), 8)             # small: still 2 steps
        chunk = tile_r
    else:
        tile_r = rows8                                        # tiny (<= 1024 elements)
        chunk = rows8

    grid = (pl.cdiv(rows8, tile_r),)                          # partial last block handled by Pallas

    out2d = pl.pallas_call(
        functools.partial(_norm2uc_kernel, n_terms=n_terms, chunk=chunk),
        out_shape=jax.ShapeDtypeStruct((rows8, LANES), jnp.float32),
        grid=grid,
        in_specs=[
            pl.BlockSpec(memory_space=pltpu.MemorySpace.SMEM),    # scalar params
            pl.BlockSpec((tile_r, LANES), lambda i: (i, 0)),      # norm tile
        ],
        out_specs=pl.BlockSpec((tile_r, LANES), lambda i: (i, 0)),
        compiler_params=pltpu.CompilerParams(
            dimension_semantics=("parallel",)),
    )(params, norm2d)

    out = out2d.reshape(Np)
    return out if Np == N else out[:N]


def _reference(norm, uc_k_bias, uc_kout_weight, n_dim=N_DIM):
    n = jnp.clip(0.1 * norm, -0.4, 0.4)
    x = n[:, None] + uc_k_bias[None, :]          # Linear(1, n_dim), W == 1
    x = jnp.where(x >= 0, x, 0.1 * x)            # LeakyReLU(0.1)
    out = x @ uc_kout_weight                     # Linear(n_dim, 1, bias=False)
    return out * (n_dim ** -0.5)


if __name__ == "__main__":
    key = jax.random.PRNGKey(0)
    k_w, k0, k1, k2 = jax.random.split(key, 4)

    # Parameters mirroring Norm2UC.__init__ (uc_kx is dead in the forward output).
    uc_k_bias = jnp.linspace(-0.8, 0.8, N_DIM, dtype=jnp.float32)
    uc_kout_weight = (0.0001 / N_DIM ** 0.5) * jax.random.normal(
        k_w, (N_DIM,), dtype=jnp.float32)
    # TODO(synk): the 0.1*n + 0.9*n.detach() gradient-scaling trick is a forward
    # identity and is not reproduced for training (would need a custom VJP).

    def run_and_check(N, k, **kwargs):
        norm = 3.0 * jax.random.normal(k, (N,), dtype=jnp.float32)  # exercises the clamp
        ref = _reference(norm, uc_k_bias, uc_kout_weight)
        out = jax.block_until_ready(
            norm2uc_forward(norm, uc_k_bias, uc_kout_weight, **kwargs))
        assert out.shape == (N,)
        assert jnp.allclose(out, ref, atol=1e-6, rtol=1e-5), f"mismatch (N={N}, {kwargs})"

    run_and_check(8292, k0)        # non-aligned N: pad + tail slice, small 2-step grid
    run_and_check(131072, k1)      # aligned N: zero wrapper copies, 2-step grid (v7x TCs)
    run_and_check(200001, k2)      # partial last block via pl.cdiv grid
    run_and_check(131072, k1, fold_linear_terms=False, tile_rows=128)  # generic path, multi-step grid

    print("KERNEL_OK")
</pallas_src>

<mosaic_0001>
module attributes {stable_mosaic.version = 11 : i64} {
  func.func @_norm2uc_kernel(%arg0: i32, %arg1: memref<34xf32, #tpu.memory_space<smem>>, %arg2: memref<40x128xf32, #tpu.memory_space<vmem>>, %arg3: memref<40x128xf32, #tpu.memory_space<vmem>>) attributes {dimension_semantics = [#tpu.dimension_semantics<parallel>], iteration_bounds = array<i64: 2>, scalar_prefetch = 0 : i64, scratch_operands = 0 : i64, tpu.core_type = #tpu.core_type<tc>, window_params = [{transform_indices = @transform_0, window_bounds = array<i64: 34>}, {transform_indices = @transform_1, window_bounds = array<i64: 40, 128>}, {transform_indices = @transform_2, window_bounds = array<i64: 40, 128>}]} {
    %c0 = arith.constant 0 : index
    %0 = memref.load %arg1[%c0] : memref<34xf32, #tpu.memory_space<smem>>
    %c1 = arith.constant 1 : index
    %1 = memref.load %arg1[%c1] : memref<34xf32, #tpu.memory_space<smem>>
    %c2 = arith.constant 2 : index
    %2 = memref.load %arg1[%c2] : memref<34xf32, #tpu.memory_space<smem>>
    %c3 = arith.constant 3 : index
    %3 = memref.load %arg1[%c3] : memref<34xf32, #tpu.memory_space<smem>>
    %c4 = arith.constant 4 : index
    %4 = memref.load %arg1[%c4] : memref<34xf32, #tpu.memory_space<smem>>
    %c5 = arith.constant 5 : index
    %5 = memref.load %arg1[%c5] : memref<34xf32, #tpu.memory_space<smem>>
    %c6 = arith.constant 6 : index
    %6 = memref.load %arg1[%c6] : memref<34xf32, #tpu.memory_space<smem>>
    %c7 = arith.constant 7 : index
    %7 = memref.load %arg1[%c7] : memref<34xf32, #tpu.memory_space<smem>>
    %c8 = arith.constant 8 : index
    %8 = memref.load %arg1[%c8] : memref<34xf32, #tpu.memory_space<smem>>
    %c9 = arith.constant 9 : index
    %9 = memref.load %arg1[%c9] : memref<34xf32, #tpu.memory_space<smem>>
    %c10 = arith.constant 10 : index
    %10 = memref.load %arg1[%c10] : memref<34xf32, #tpu.memory_space<smem>>
    %c11 = arith.constant 11 : index
    %11 = memref.load %arg1[%c11] : memref<34xf32, #tpu.memory_space<smem>>
    %c12 = arith.constant 12 : index
    %12 = memref.load %arg1[%c12] : memref<34xf32, #tpu.memory_space<smem>>
    %c13 = arith.constant 13 : index
    %13 = memref.load %arg1[%c13] : memref<34xf32, #tpu.memory_space<smem>>
    %c14 = arith.constant 14 : index
    %14 = memref.load %arg1[%c14] : memref<34xf32, #tpu.memory_space<smem>>
    %c15 = arith.constant 15 : index
    %15 = memref.load %arg1[%c15] : memref<34xf32, #tpu.memory_space<smem>>
    %c16 = arith.constant 16 : index
    %16 = memref.load %arg1[%c16] : memref<34xf32, #tpu.memory_space<smem>>
    %c17 = arith.constant 17 : index
    %17 = memref.load %arg1[%c17] : memref<34xf32, #tpu.memory_space<smem>>
    %c18 = arith.constant 18 : index
    %18 = memref.load %arg1[%c18] : memref<34xf32, #tpu.memory_space<smem>>
    %c19 = arith.constant 19 : index
    %19 = memref.load %arg1[%c19] : memref<34xf32, #tpu.memory_space<smem>>
    %c20 = arith.constant 20 : index
    %20 = memref.load %arg1[%c20] : memref<34xf32, #tpu.memory_space<smem>>
    %c21 = arith.constant 21 : index
    %21 = memref.load %arg1[%c21] : memref<34xf32, #tpu.memory_space<smem>>
    %c22 = arith.constant 22 : index
    %22 = memref.load %arg1[%c22] : memref<34xf32, #tpu.memory_space<smem>>
    %c23 = arith.constant 23 : index
    %23 = memref.load %arg1[%c23] : memref<34xf32, #tpu.memory_space<smem>>
    %c24 = arith.constant 24 : index
    %24 = memref.load %arg1[%c24] : memref<34xf32, #tpu.memory_space<smem>>
    %c25 = arith.constant 25 : index
    %25 = memref.load %arg1[%c25] : memref<34xf32, #tpu.memory_space<smem>>
    %c26 = arith.constant 26 : index
    %26 = memref.load %arg1[%c26] : memref<34xf32, #tpu.memory_space<smem>>
    %c27 = arith.constant 27 : index
    %27 = memref.load %arg1[%c27] : memref<34xf32, #tpu.memory_space<smem>>
    %c28 = arith.constant 28 : index
    %28 = memref.load %arg1[%c28] : memref<34xf32, #tpu.memory_space<smem>>
    %c29 = arith.constant 29 : index
    %29 = memref.load %arg1[%c29] : memref<34xf32, #tpu.memory_space<smem>>
    %c30 = arith.constant 30 : index
    %30 = memref.load %arg1[%c30] : memref<34xf32, #tpu.memory_space<smem>>
    %c31 = arith.constant 31 : index
    %31 = memref.load %arg1[%c31] : memref<34xf32, #tpu.memory_space<smem>>
    %c32 = arith.constant 32 : index
    %32 = memref.load %arg1[%c32] : memref<34xf32, #tpu.memory_space<smem>>
    %c33 = arith.constant 33 : index
    %33 = memref.load %arg1[%c33] : memref<34xf32, #tpu.memory_space<smem>>
    %c0_i32 = arith.constant 0 : i32
    %c40_i32 = arith.constant 40 : i32
    %34 = arith.muli %c0_i32, %c40_i32 : i32
    %35 = tpu.assume_multiple %34, 8 : i32
    %36 = arith.index_cast %35 : i32 to index
    %c0_0 = arith.constant 0 : index
    %37 = vector.load %arg2[%36, %c0_0] : memref<40x128xf32, #tpu.memory_space<vmem>>, vector<40x128xf32>
    %cst = arith.constant -4.000000e+00 : f32
    %cst_1 = arith.constant 4.000000e+00 : f32
    %38 = vector.broadcast %cst : f32 to vector<40x128xf32>
    %39 = arith.maximumf %38, %37 : vector<40x128xf32>
    %40 = vector.broadcast %cst_1 : f32 to vector<40x128xf32>
    %41 = arith.minimumf %40, %39 : vector<40x128xf32>
    %42 = vector.broadcast %1 : f32 to vector<40x128xf32>
    %43 = arith.mulf %42, %41 : vector<40x128xf32>
    %44 = vector.broadcast %0 : f32 to vector<40x128xf32>
    %45 = arith.addf %44, %43 : vector<40x128xf32>
    %46 = vector.broadcast %2 : f32 to vector<40x128xf32>
    %47 = arith.addf %41, %46 : vector<40x128xf32>
    %48 = math.absf %47 : vector<40x128xf32>
    %49 = vector.broadcast %18 : f32 to vector<40x128xf32>
    %50 = arith.mulf %49, %48 : vector<40x128xf32>
    %51 = arith.addf %45, %50 : vector<40x128xf32>
    %52 = vector.broadcast %3 : f32 to vector<40x128xf32>
    %53 = arith.addf %41, %52 : vector<40x128xf32>
    %54 = math.absf %53 : vector<40x128xf32>
    %55 = vector.broadcast %19 : f32 to vector<40x128xf32>
    %56 = arith.mulf %55, %54 : vector<40x128xf32>
    %57 = arith.addf %51, %56 : vector<40x128xf32>
    %58 = vector.broadcast %4 : f32 to vector<40x128xf32>
    %59 = arith.addf %41, %58 : vector<40x128xf32>
    %60 = math.absf %59 : vector<40x128xf32>
    %61 = vector.broadcast %20 : f32 to vector<40x128xf32>
    %62 = arith.mulf %61, %60 : vector<40x128xf32>
    %63 = arith.addf %57, %62 : vector<40x128xf32>
    %64 = vector.broadcast %5 : f32 to vector<40x128xf32>
    %65 = arith.addf %41, %64 : vector<40x128xf32>
    %66 = math.absf %65 : vector<40x128xf32>
    %67 = vector.broadcast %21 : f32 to vector<40x128xf32>
    %68 = arith.mulf %67, %66 : vector<40x128xf32>
    %69 = arith.addf %63, %68 : vector<40x128xf32>
    %70 = vector.broadcast %6 : f32 to vector<40x128xf32>
    %71 = arith.addf %41, %70 : vector<40x128xf32>
    %72 = math.absf %71 : vector<40x128xf32>
    %73 = vector.broadcast %22 : f32 to vector<40x128xf32>
    %74 = arith.mulf %73, %72 : vector<40x128xf32>
    %75 = arith.addf %69, %74 : vector<40x128xf32>
    %76 = vector.broadcast %7 : f32 to vector<40x128xf32>
    %77 = arith.addf %41, %76 : vector<40x128xf32>
    %78 = math.absf %77 : vector<40x128xf32>
    %79 = vector.broadcast %23 : f32 to vector<40x128xf32>
    %80 = arith.mulf %79, %78 : vector<40x128xf32>
    %81 = arith.addf %75, %80 : vector<40x128xf32>
    %82 = vector.broadcast %8 : f32 to vector<40x128xf32>
    %83 = arith.addf %41, %82 : vector<40x128xf32>
    %84 = math.absf %83 : vector<40x128xf32>
    %85 = vector.broadcast %24 : f32 to vector<40x128xf32>
    %86 = arith.mulf %85, %84 : vector<40x128xf32>
    %87 = arith.addf %81, %86 : vector<40x128xf32>
    %88 = vector.broadcast %9 : f32 to vector<40x128xf32>
    %89 = arith.addf %41, %88 : vector<40x128xf32>
    %90 = math.absf %89 : vector<40x128xf32>
    %91 = vector.broadcast %25 : f32 to vector<40x128xf32>
    %92 = arith.mulf %91, %90 : vector<40x128xf32>
    %93 = arith.addf %87, %92 : vector<40x128xf32>
    %94 = vector.broadcast %10 : f32 to vector<40x128xf32>
    %95 = arith.addf %41, %94 : vector<40x128xf32>
    %96 = math.absf %95 : vector<40x128xf32>
    %97 = vector.broadcast %26 : f32 to vector<40x128xf32>
    %98 = arith.mulf %97, %96 : vector<40x128xf32>
    %99 = arith.addf %93, %98 : vector<40x128xf32>
    %100 = vector.broadcast %11 : f32 to vector<40x128xf32>
    %101 = arith.addf %41, %100 : vector<40x128xf32>
    %102 = math.absf %101 : vector<40x128xf32>
    %103 = vector.broadcast %27 : f32 to vector<40x128xf32>
    %104 = arith.mulf %103, %102 : vector<40x128xf32>
    %105 = arith.addf %99, %104 : vector<40x128xf32>
    %106 = vector.broadcast %12 : f32 to vector<40x128xf32>
    %107 = arith.addf %41, %106 : vector<40x128xf32>
    %108 = math.absf %107 : vector<40x128xf32>
    %109 = vector.broadcast %28 : f32 to vector<40x128xf32>
    %110 = arith.mulf %109, %108 : vector<40x128xf32>
    %111 = arith.addf %105, %110 : vector<40x128xf32>
    %112 = vector.broadcast %13 : f32 to vector<40x128xf32>
    %113 = arith.addf %41, %112 : vector<40x128xf32>
    %114 = math.absf %113 : vector<40x128xf32>
    %115 = vector.broadcast %29 : f32 to vector<40x128xf32>
    %116 = arith.mulf %115, %114 : vector<40x128xf32>
    %117 = arith.addf %111, %116 : vector<40x128xf32>
    %118 = vector.broadcast %14 : f32 to vector<40x128xf32>
    %119 = arith.addf %41, %118 : vector<40x128xf32>
    %120 = math.absf %119 : vector<40x128xf32>
    %121 = vector.broadcast %30 : f32 to vector<40x128xf32>
    %122 = arith.mulf %121, %120 : vector<40x128xf32>
    %123 = arith.addf %117, %122 : vector<40x128xf32>
    %124 = vector.broadcast %15 : f32 to vector<40x128xf32>
    %125 = arith.addf %41, %124 : vector<40x128xf32>
    %126 = math.absf %125 : vector<40x128xf32>
    %127 = vector.broadcast %31 : f32 to vector<40x128xf32>
    %128 = arith.mulf %127, %126 : vector<40x128xf32>
    %129 = arith.addf %123, %128 : vector<40x128xf32>
    %130 = vector.broadcast %16 : f32 to vector<40x128xf32>
    %131 = arith.addf %41, %130 : vector<40x128xf32>
    %132 = math.absf %131 : vector<40x128xf32>
    %133 = vector.broadcast %32 : f32 to vector<40x128xf32>
    %134 = arith.mulf %133, %132 : vector<40x128xf32>
    %135 = arith.addf %129, %134 : vector<40x128xf32>
    %136 = vector.broadcast %17 : f32 to vector<40x128xf32>
    %137 = arith.addf %41, %136 : vector<40x128xf32>
    %138 = math.absf %137 : vector<40x128xf32>
    %139 = vector.broadcast %33 : f32 to vector<40x128xf32>
    %140 = arith.mulf %139, %138 : vector<40x128xf32>
    %141 = arith.addf %135, %140 : vector<40x128xf32>
    %142 = arith.index_cast %35 : i32 to index
    %c0_2 = arith.constant 0 : index
    %143 = vector.load %arg3[%142, %c0_2] : memref<40x128xf32, #tpu.memory_space<vmem>>, vector<40x128xf32>
    tpu.vector_store %arg3[%142, %c0_2], %141 {strides = array<i32>} : memref<40x128xf32, #tpu.memory_space<vmem>>, vector<40x128xf32>,
    return
  }
  func.func @transform_0(%arg0: i32) -> i32 {
    %c0_i32 = arith.constant 0 : i32
    %c0_i32_0 = arith.constant 0 : i32
    return %c0_i32 : i32
  }
  func.func @transform_1(%arg0: i32) -> (i32, i32) {
    %c0_i32 = arith.constant 0 : i32
    %c0_i32_0 = arith.constant 0 : i32
    return %arg0, %c0_i32 : i32, i32
  }
  func.func @transform_2(%arg0: i32) -> (i32, i32) {
    %c0_i32 = arith.constant 0 : i32
    %c0_i32_0 = arith.constant 0 : i32
    return %arg0, %c0_i32 : i32, i32
  }
}

</mosaic_0001>

<bundles_post_ra>
// kernel: tpu_custom_call.1
= control target key start
LH: loop header
LB: loop body
LE: loop exit
PB: predicated region body
PF: predicated region fallthrough
CT: control target
= control target key end

     0   :  { %7 = vsyncpa [#allocation5], 0  ;;  %s1399_s0 = inlined_call_operand.hbm [shape: f32[34], index: 0, kind: input, shape index: {}]   ;;  %s1400_s1 = inlined_call_operand.hbm [shape: f32[72,128], index: 1, kind: input, shape index: {}]   ;;  %s1401_s2 = inlined_call_operand.hbm [shape: f32[72,128], index: 2, kind: output, shape index: {}]  }
   0x1   :  { %8 = vsyncpa [#allocation3], 0 }
   0x2   :  { %10 = vsyncpa [#allocation3 + $0x1], 0 }
   0x3   :  { %11 = vsyncpa [#allocation4], 0 }
   0x4   :  { %13 = vsyncpa [#allocation4 + $0x1], 0  ;;  %s956_s9 = smov 0   ;;  %s958_s10 = smov 0  }
   0x5   :  { %s960_s11 = smov 0   ;;  %s962_s12 = smov 0  }
   0x6 LB: > { %s977_s13 = sadd.s32 4294967295, %s932_s12   ;;  %s713_s14 = sadd.s32 4294967294, %s932_s12   ;;  %s932_s12 = sphi %s962_s12, %s1417_s12   ;;  %s928_s11 = sphi %s960_s11, %s1416_s11   ;;  %s924_s10 = sphi %s958_s10, %s1415_s10   ;;  %s920_s9 = sphi %s956_s9, %s1414_s9  }
   0x7   : > { %s981_s15 = sadd.s32 1, %s932_s12   ;;  %s47_s16 = sadd.s32 1, %s928_s11 }
   0x8   : > { %s44_s17 = ssub.s32 %s932_s12, %s981_s15  ;;  %p54_p0 = scmp.ne.s32.totalorder %s928_s11, %s924_s10 }
   0x9   : > { %p45_p1 = scmp.eq.s32.totalorder %s44_s17, 0  ;;  %p55_p2 = scmp.eq.s32.totalorder %s932_s12, 0 }
   0xa   : > { %p60_p3 = scmp.ne.s32.totalorder %s924_s10, %s920_s9  ;;  %p1403_p4 = scmp.eq.s32.totalorder %s977_s13, 0 }
   0xb   : > { %s993_s18 = scalar_select %p45_p1, %s928_s11, %s47_s16  }
   0xc   : > { %p995_p5 = por %p55_p2, %p54_p0  ;;  %p1001_p6 = por %p1403_p4, %p60_p3 }
   0xd   : > { %p84_p7 = scmp.eq.s32.totalorder %s977_s13, 1  ;;  %p90_p8 = scmp.eq.s32.totalorder %s713_s14, 1 }
   0xe   : > { %p714_p9 = scmp.ge.s32.totalorder %s932_s12, 1  ;;  %p97_p10 = scmp.lt.s32.totalorder %s932_s12, 3 }
   0xf   : > { %p1008_p11 = por %p84_p7, %p54_p0  ;;  %p1012_p12 = por %p90_p8, %p60_p3 }
  0x10   : > { %p1016_p13 = pnand %p714_p9, %p97_p10  ;;  %s934_s24 = smov [#allocation2]  }
  0x11   : > { %s1406_s21 = scalar_select %p1008_p11, 1, 0 }
  0x12   : > { %s1407_s22 = scalar_select %p1012_p12, 1, 0 }
  0x13   : > { %p779_p1 = pneg %p1016_p13  ;;  %p1402_p0 = scmp.ge.s32.totalorder %s932_s12, 2 }
  0x15   : > { %p780_p2 = pnand %p779_p1, %p1403_p4  ;;  %115 = sbr.rel (%p1402_p0) target bundleno = 60 (0x3c), region = 20 }
  0x17   : > { %782 = dma.hbm_to_smem (!%p780_p2), %s1399_s0, 16, %s934_s24, [#allocation5]  }
  0x1a   : > { %118 = sbr.rel (!%p995_p5) target bundleno = 60 (0x3c), region = 24  ;;  %s119_s27 = sand.u32 (%p995_p5), 1, %s928_s11  }
  0x1b   : > { %s124_s28 = smul.u32 (%p995_p5), 5, %s932_s12  ;;  %s1037_s5 = scalar_lea.sflag (%p995_p5), [#allocation3], %s119_s27 }
  0x1c   : > { %s771_s29 = smul.u32 (%p995_p5), 40, %s119_s27 }
  0x1d   : > { %s125_s30 = ssub.s32 (%p995_p5), 9, %s124_s28 }
  0x1e   : > { %p126_p3 = scmp.lt.s32.totalorder (%p995_p5), %s125_s30, 5  ;;  %s123_s6 = scalar_lea.vmem (%p995_p5), [#allocation6], %s771_s29 }
  0x20   : > { %s1419_s30 = smov (!%p126_p3, %s125_s30), 5 }
  0x21   : > { %s1034_s3 = sshll.u32 %s1419_s30, 7 }
  0x22   : > { %s130_s4 = ssub.s32 640, %s1034_s3 }
  0x23   : > { %131 = vsyncadd %s1037_s5, %s130_s4  ;;  %p718_p5 = scmp.ne.s32.totalorder %s1034_s3, 0  ;;  %s769_s7 = smul.u32 640, %s932_s12 }
  0x24   : > { %s136_s8 = sshll.u32 %s123_s6, 4  ;;  %s842_s26 = scalar_lea.hbm %s1400_s1, 1152  ;;  %s1047_s8 = int_to_ptr.vmem [resolvable:$true] %s136_s8 }
  0x25   : > { %s1045_s17 = scalar_lea.hbm %s1400_s1, %s769_s7 }
  0x26   : > { %s838_s19 = scalar_lea.hbm %s1045_s17, %s1034_s3  ;;  %p843_p10 = scmp.lt.s32.totalorder %s1045_s17, %s1400_s1 }
  0x27   : > { %p839_p7 = scmp.ne.s32.totalorder %s1045_s17, %s838_s19  ;;  %p844_p1 = scmp.lt.s32.totalorder %s842_s26, %s838_s19 }
  0x29   : > { %p840_p8 = pnand %p839_p7, %p718_p5  ;;  %p845_p2 = por %p844_p1, %p843_p10 }
  0x2b   : > { %p841_p9 = pneg %p840_p8 }
  0x2d   : > { %p846_p3 = pnand %p845_p2, %p841_p9 }
  0x2f   : > { %849 = shalt.err (!%p846_p3)
}
  0x30   : > { %s850_s29 = scalar_lea.vmem %s1047_s8, %s1034_s3  ;;  %s935_s30 = smov [#allocation6]  }
  0x31   : > { %p851_p7 = scmp.ne.s32.totalorder %s1047_s8, %s850_s29  ;;  %s854_s4 = sshll.u32 %s935_s30, 4  ;;  %s855_s4 = int_to_ptr.vmem [resolvable:$false] %s854_s4 }
  0x32   : > { %s856_s6 = scalar_lea.vmem %s855_s4, 1280  ;;  %p857_p4 = scmp.lt.s32.totalorder %s1047_s8, %s855_s4 }
  0x33   : > { %p852_p8 = pnand %p851_p7, %p718_p5  ;;  %p858_p12 = scmp.lt.s32.totalorder %s856_s6, %s850_s29 }
  0x35   : > { %p853_p0 = pneg %p852_p8  ;;  %p859_p11 = por %p858_p12, %p857_p4 }
  0x37   : > { %p860_p10 = pnand %p859_p11, %p853_p0 }
  0x39   : > { %863 = shalt.err (!%p860_p10)
}
  0x3a   : > { %s936_s7 = smov 128   ;;  %s937_s14 = smov 8  }
  0x3b   : > { %142 = dma.hbm_to_vmem [thread:$0]  (%p718_p5), %s1045_s17, %s1034_s3, %s1047_s8, %s1037_s5, %s936_s7, %s936_s7, %s937_s14  }
  0x3c PF: > { %148 = sbr.rel (%p1016_p13) target bundleno = 203 (0xcb), region = 28  ;;  %p1409_p9 = scmp.eq.s32.totalorder (!%p1016_p13), %s977_s13, 0 }
  0x41   : > { %907 = dma.done.wait (%p1409_p9), [#allocation5], 16   ;;  %p1410_p4 = pmov %p1409_p9 }
  0x42   : > { %s1080_s16 = sand.u32 1, %s924_s10  }
  0x43   : > { %909 = vsyncadd (%p1410_p4), [#allocation5], 4294967280  ;;  %s772_s19 = smul.u32 40, %s1080_s16  ;;  %s155_s3 = scalar_lea.sflag [#allocation3], %s1080_s16 }
  0x45   : > { %s158_s5 = scalar_lea.vmem [#allocation6], %s772_s19 }
  0x46   : > { %911 = dma.done.wait (%p1001_p6), %s155_s3, 640  }
  0x47   : > { %913 = vsyncadd (%p1001_p6), %s155_s3, 4294966656 }
  0x48   : > { %163 = sfence }
  0x49   : > { %s190_s23 = sld [smem:[#allocation2]]  ;;  %v224_v0 = vld [vmem:[%s158_s5] sm:$0xff]  ;;  %v225_v1 = vld [vmem:[%s158_s5 + $0x8] sm:$0xff]  ;;  %v226_v2 = vld [vmem:[%s158_s5 + $0x10] sm:$0xff]  ;;  %p1411_p6 = scmp.ne.s32.totalorder %s1406_s21, 0 }
  0x4a   : > { %s724_s8 = sld [smem:[#allocation2 + $0x1]]  ;;  %v227_v3 = vld [vmem:[%s158_s5 + $0x18] sm:$0xff]  ;;  %v228_v4 = vld [vmem:[%s158_s5 + $0x20] sm:$0xff]  ;;  %v1092_v5 = vclamps-f32 %v224_v0, 4.0  ;;  %v1094_v6 = vclamps-f32 %v225_v1, 4.0  ;;  %v1096_v7 = vclamps-f32 %v226_v2, 4.0 }
  0x4b   : > { %s725_s17 = sld [smem:[#allocation2 + $0x2]]  ;;  %v1098_v8 = vclamps-f32 %v227_v3, 4.0  ;;  %v1100_v9 = vclamps-f32 %v228_v4, 4.0 }
  0x4c   : > { %s726_s24 = sld [smem:[#allocation2 + $0x3]] }
  0x4d   : > { %s1090_s25 = sld [smem:[#allocation2 + $0x4]] }
  0x4e   : > { %s1106_s20 = sld [smem:[#allocation2 + $0x5]] }
  0x4f   : > { %v245_v11 = vstv %s190_s23  ;;  %s1122_s26 = sld [smem:[#allocation2 + $0x6]] }
  0x50   : > { %v239_v10 = vstv %s724_s8  ;;  %s1142_s27 = sld [smem:[#allocation2 + $0x7]] }
  0x51   : > { %v240_v12 = vmul.f32 %v1092_v5, %v239_v10  ;;  %v241_v13 = vmul.f32 %v1094_v6, %v239_v10  ;;  %v242_v14 = vmul.f32 %v1096_v7, %v239_v10  ;;  %v243_v15 = vmul.f32 %v1098_v8, %v239_v10  ;;  %s741_s28 = sld [smem:[#allocation2 + $0x12]] }
  0x52   : > { %v244_v16 = vmul.f32 %v1100_v9, %v239_v10  ;;  %v251_v17 = vstv %s725_s17  ;;  %v273_v18 = vstv %s726_s24  ;;  %s1167_s29 = sld [smem:[#allocation2 + $0x13]] }
  0x53   : > { %v1109_v19 = vadd.f32 %v245_v11, %v240_v12  ;;  %v1111_v20 = vadd.f32 %v245_v11, %v241_v13  ;;  %v1113_v21 = vadd.f32 %v245_v11, %v242_v14  ;;  %v1115_v22 = vadd.f32 %v245_v11, %v243_v15  ;;  %s743_s30 = sld [smem:[#allocation2 + $0x14]] }
  0x54   : > { %v1117_v23 = vadd.f32 %v245_v11, %v244_v16  ;;  %v252_v24 = vadd.f32 %v1092_v5, %v251_v17  ;;  %v253_v25 = vadd.f32 %v1094_v6, %v251_v17  ;;  %v254_v26 = vadd.f32 %v1096_v7, %v251_v17  ;;  %s1196_s4 = sld [smem:[#allocation2 + $0x15]] }
  0x55   : > { %v255_v27 = vadd.f32 %v1098_v8, %v251_v17  ;;  %v256_v28 = vadd.f32 %v1100_v9, %v251_v17  ;;  %v1127_v29 = vadd.f32 %v1092_v5, %v273_v18  ;;  %v1130_v30 = vadd.f32 %v1094_v6, %v273_v18  ;;  %s1203_s6 = sld [smem:[#allocation2 + $0x16]] }
  0x56   : > { %v257_v31 = vand.u32 2147483647, %v252_v24  ;;  %v258_v32 = vand.u32 2147483647, %v253_v25  ;;  %v1133_v33 = vadd.f32 %v1096_v7, %v273_v18  ;;  %v1136_v34 = vadd.f32 %v1098_v8, %v273_v18  ;;  %s1212_s7 = sld [smem:[#allocation2 + $0x17]] }
  0x57   : > { %v259_v35 = vand.u32 2147483647, %v254_v26  ;;  %v260_v36 = vand.u32 2147483647, %v255_v27  ;;  %v1139_v37 = vadd.f32 %v1100_v9, %v273_v18  ;;  %v295_v38 = vstv %s1090_s25  ;;  %s1215_s14 = sld [smem:[#allocation2 + $0x8]] }
  0x58   : > { %v261_v39 = vand.u32 2147483647, %v256_v28  ;;  %v279_v40 = vand.u32 2147483647, %v1127_v29  ;;  %v296_v41 = vadd.f32 %v1092_v5, %v295_v38  ;;  %v297_v42 = vadd.f32 %v1094_v6, %v295_v38  ;;  %s1218_s3 = sld [smem:[#allocation2 + $0x18]] }
  0x59   : > { %v280_v43 = vand.u32 2147483647, %v1130_v30  ;;  %v281_v44 = vand.u32 2147483647, %v1133_v33  ;;  %v1150_v45 = vadd.f32 %v1096_v7, %v295_v38  ;;  %v1153_v46 = vadd.f32 %v1098_v8, %v295_v38  ;;  %s1220_s5 = sld [smem:[#allocation2 + $0x9]] }
  0x5a   : > { %v282_v47 = vand.u32 2147483647, %v1136_v34  ;;  %v283_v48 = vand.u32 2147483647, %v1139_v37  ;;  %v1158_v49 = vadd.f32 %v1100_v9, %v295_v38  ;;  %v317_v50 = vstv %s1106_s20  ;;  %s1232_s23 = sld [smem:[#allocation2 + $0x19]] }
  0x5b   : > { %v301_v51 = vand.u32 2147483647, %v296_v41  ;;  %v302_v52 = vand.u32 2147483647, %v297_v42  ;;  %v1162_v53 = vadd.f32 %v1092_v5, %v317_v50  ;;  %v1165_v54 = vadd.f32 %v1094_v6, %v317_v50  ;;  %s1239_s8 = sld [smem:[#allocation2 + $0xa]] }
  0x5c   : > { %v303_v55 = vand.u32 2147483647, %v1150_v45  ;;  %v304_v56 = vand.u32 2147483647, %v1153_v46  ;;  %v1172_v57 = vadd.f32 %v1096_v7, %v317_v50  ;;  %v1175_v58 = vadd.f32 %v1098_v8, %v317_v50  ;;  %s1243_s17 = sld [smem:[#allocation2 + $0x1a]] }
  0x5d   : > { %v305_v59 = vand.u32 2147483647, %v1158_v49  ;;  %v322_v60 = vadd.f32 %v1100_v9, %v317_v50  ;;  %v323_v61 = vand.u32 2147483647, %v1162_v53  ;;  %v339_v62 = vstv %s1122_s26  ;;  %s1249_s24 = sld [smem:[#allocation2 + $0xb]] }
  0x5e   : > { %v324_v63 = vand.u32 2147483647, %v1165_v54  ;;  %v325_v0 = vand.u32 2147483647, %v1172_v57  ;;  %v340_v1 = vadd.f32 %v1092_v5, %v339_v62  ;;  %v341_v2 = vadd.f32 %v1094_v6, %v339_v62  ;;  %s1254_s25 = sld [smem:[#allocation2 + $0x1b]] }
  0x5f   : > { %v326_v3 = vand.u32 2147483647, %v1175_v58  ;;  %v327_v4 = vand.u32 2147483647, %v322_v60  ;;  %v342_v10 = vadd.f32 %v1096_v7, %v339_v62  ;;  %v1188_v11 = vadd.f32 %v1098_v8, %v339_v62  ;;  %s1261_s20 = sld [smem:[#allocation2 + $0xc]] }
  0x60   : > { %v1191_v12 = vadd.f32 %v1100_v9, %v339_v62  ;;  %v345_v13 = vand.u32 2147483647, %v340_v1  ;;  %v346_v14 = vand.u32 2147483647, %v341_v2  ;;  %v1194_v15 = vstv %s1142_s27  ;;  %s1265_s26 = sld [smem:[#allocation2 + $0x1c]] }
  0x61   : > { %v262_v16 = vstv %s741_s28  ;;  %v347_v17 = vand.u32 2147483647, %v342_v10  ;;  %v348_v18 = vand.u32 2147483647, %v1188_v11  ;;  %v1201_v24 = vadd.f32 %v1092_v5, %v1194_v15  ;;  %s1271_s27 = sld [smem:[#allocation2 + $0xd]] }
  0x62   : > { %v263_v25 = vmul.f32 %v262_v16, %v257_v31  ;;  %v264_v26 = vmul.f32 %v262_v16, %v258_v32  ;;  %v265_v27 = vmul.f32 %v262_v16, %v259_v35  ;;  %v266_v28 = vmul.f32 %v262_v16, %v260_v36  ;;  %s1276_s28 = sld [smem:[#allocation2 + $0x1d]] }
  0x63   : > { %v267_v29 = vmul.f32 %v262_v16, %v261_v39  ;;  %v284_v30 = vstv %s1167_s29  ;;  %v306_v33 = vstv %s743_s30  ;;  %v349_v34 = vand.u32 2147483647, %v1191_v12  ;;  %s1283_s29 = sld [smem:[#allocation2 + $0xe]] }
  0x64   : > { %v268_v37 = vadd.f32 %v263_v25, %v1109_v19  ;;  %v269_v38 = vadd.f32 %v264_v26, %v1111_v20  ;;  %v270_v41 = vadd.f32 %v265_v27, %v1113_v21  ;;  %v271_v42 = vadd.f32 %v266_v28, %v1115_v22  ;;  %s1287_s30 = sld [smem:[#allocation2 + $0x1e]] }
  0x65   : > { %v272_v31 = vadd.f32 %v267_v29, %v1117_v23  ;;  %v285_v32 = vmul.f32 %v284_v30, %v279_v40  ;;  %v286_v35 = vmul.f32 %v284_v30, %v280_v43  ;;  %v287_v36 = vmul.f32 %v284_v30, %v281_v44 }
  0x66   : > { %v288_v45 = vmul.f32 %v284_v30, %v282_v47  ;;  %v289_v39 = vmul.f32 %v284_v30, %v283_v48  ;;  %v307_v46 = vmul.f32 %v306_v33, %v301_v51  ;;  %v308_v49 = vmul.f32 %v306_v33, %v302_v52 }
  0x67   : > { %v290_v50 = vadd.f32 %v285_v32, %v268_v37  ;;  %v291_v53 = vadd.f32 %v286_v35, %v269_v38  ;;  %v292_v54 = vadd.f32 %v287_v36, %v270_v41  ;;  %v309_v19 = vmul.f32 %v306_v33, %v303_v55 }
  0x68   : > { %v293_v57 = vadd.f32 %v288_v45, %v271_v42  ;;  %v294_v20 = vadd.f32 %v289_v39, %v272_v31  ;;  %v310_v21 = vmul.f32 %v306_v33, %v304_v56  ;;  %v311_v58 = vmul.f32 %v306_v33, %v305_v59 }
  0x69   : > { %v312_v22 = vadd.f32 %v307_v46, %v290_v50  ;;  %v313_v23 = vadd.f32 %v308_v49, %v291_v53  ;;  %v314_v40 = vadd.f32 %v309_v19, %v292_v54  ;;  %v328_v43 = vstv %s1196_s4  ;;  %s1293_s4 = sld [smem:[#allocation2 + $0xf]] }
  0x6a   : > { %v315_v44 = vadd.f32 %v310_v21, %v293_v57  ;;  %v316_v47 = vadd.f32 %v311_v58, %v294_v20  ;;  %v329_v48 = vmul.f32 %v328_v43, %v323_v61  ;;  %v330_v51 = vmul.f32 %v328_v43, %v324_v63 }
  0x6b   : > { %v331_v52 = vmul.f32 %v328_v43, %v325_v0  ;;  %v332_v60 = vmul.f32 %v328_v43, %v326_v3  ;;  %v333_v55 = vmul.f32 %v328_v43, %v327_v4  ;;  %v350_v62 = vstv %s1203_s6  ;;  %s1298_s6 = sld [smem:[#allocation2 + $0x1f]] }
  0x6c   : > { %v334_v56 = vadd.f32 %v329_v48, %v312_v22  ;;  %v335_v59 = vadd.f32 %v330_v51, %v313_v23  ;;  %v351_v1 = vmul.f32 %v350_v62, %v345_v13  ;;  %v352_v2 = vmul.f32 %v350_v62, %v346_v14 }
  0x6d   : > { %v336_v10 = vadd.f32 %v331_v52, %v314_v40  ;;  %v337_v11 = vadd.f32 %v332_v60, %v315_v44  ;;  %v353_v12 = vmul.f32 %v350_v62, %v347_v17  ;;  %v338_v16 = vadd.f32 %v333_v55, %v316_v47 }
  0x6e   : > { %v354_v25 = vmul.f32 %v350_v62, %v348_v18  ;;  %v355_v26 = vmul.f32 %v350_v62, %v349_v34  ;;  %v356_v27 = vadd.f32 %v351_v1, %v334_v56  ;;  %v357_v61 = vadd.f32 %v352_v2, %v335_v59 }
  0x6f   : > { %v363_v63 = vadd.f32 %v1094_v6, %v1194_v15  ;;  %v364_v0 = vadd.f32 %v1096_v7, %v1194_v15  ;;  %v365_v3 = vadd.f32 %v1098_v8, %v1194_v15  ;;  %v358_v4 = vadd.f32 %v353_v12, %v336_v10 }
  0x70   : > { %v359_v13 = vadd.f32 %v354_v25, %v337_v11  ;;  %v366_v14 = vadd.f32 %v1100_v9, %v1194_v15  ;;  %v367_v17 = vand.u32 2147483647, %v1201_v24  ;;  %v372_v30 = vstv %s1212_s7  ;;  %s1305_s7 = sld [smem:[#allocation2 + $0x10]] }
  0x71   : > { %v368_v18 = vand.u32 2147483647, %v363_v63  ;;  %v369_v28 = vand.u32 2147483647, %v364_v0  ;;  %v370_v29 = vand.u32 2147483647, %v365_v3  ;;  %v360_v33 = vadd.f32 %v355_v26, %v338_v16 }
  0x72   : > { %v371_v34 = vand.u32 2147483647, %v366_v14  ;;  %v373_v37 = vmul.f32 %v372_v30, %v367_v17  ;;  %v383_v38 = vstv %s1215_s14  ;;  %v394_v36 = vstv %s1218_s3  ;;  %s1309_s14 = sld [smem:[#allocation2 + $0x20]] }
  0x73   : > { %v374_v41 = vmul.f32 %v372_v30, %v368_v18  ;;  %v375_v42 = vmul.f32 %v372_v30, %v369_v28  ;;  %v376_v31 = vmul.f32 %v372_v30, %v370_v29  ;;  %v384_v32 = vadd.f32 %v1092_v5, %v383_v38  ;;  %s1315_s3 = sld [smem:[#allocation2 + $0x11]] }
  0x74   : > { %v377_v35 = vmul.f32 %v372_v30, %v371_v34  ;;  %v385_v15 = vadd.f32 %v1094_v6, %v383_v38  ;;  %v386_v24 = vadd.f32 %v1096_v7, %v383_v38  ;;  %v378_v45 = vadd.f32 %v373_v37, %v356_v27 }
  0x75   : > { %v379_v39 = vadd.f32 %v374_v41, %v357_v61  ;;  %v380_v46 = vadd.f32 %v375_v42, %v358_v4  ;;  %v387_v49 = vadd.f32 %v1098_v8, %v383_v38  ;;  %v381_v50 = vadd.f32 %v376_v31, %v359_v13 }
  0x76   : > { %v388_v53 = vadd.f32 %v1100_v9, %v383_v38  ;;  %v389_v54 = vand.u32 2147483647, %v384_v32  ;;  %v390_v19 = vand.u32 2147483647, %v385_v15  ;;  %v382_v57 = vadd.f32 %v377_v35, %v360_v33 }
  0x77   : > { %v391_v20 = vand.u32 2147483647, %v386_v24  ;;  %v392_v21 = vand.u32 2147483647, %v387_v49  ;;  %v405_v58 = vstv %s1220_s5  ;;  %v416_v62 = vstv %s1232_s23  ;;  %s1320_s5 = sld [smem:[#allocation2 + $0x21]]  ;;  %s179_s23 = scalar_lea.vmem [#allocation7], %s772_s19 }
  0x78   : > { %v393_v22 = vand.u32 2147483647, %v388_v53  ;;  %v395_v23 = vmul.f32 %v394_v36, %v389_v54  ;;  %v396_v40 = vmul.f32 %v394_v36, %v390_v19  ;;  %v406_v43 = vadd.f32 %v1092_v5, %v405_v58 }
  0x79   : > { %v397_v44 = vmul.f32 %v394_v36, %v391_v20  ;;  %v398_v47 = vmul.f32 %v394_v36, %v392_v21  ;;  %v407_v48 = vadd.f32 %v1094_v6, %v405_v58  ;;  %v408_v51 = vadd.f32 %v1096_v7, %v405_v58 }
  0x7a   : > { %v399_v52 = vmul.f32 %v394_v36, %v393_v22  ;;  %v400_v60 = vadd.f32 %v395_v23, %v378_v45  ;;  %v409_v55 = vadd.f32 %v1098_v8, %v405_v58  ;;  %v401_v56 = vadd.f32 %v396_v40, %v379_v39 }
  0x7b   : > { %v402_v59 = vadd.f32 %v397_v44, %v380_v46  ;;  %v410_v1 = vadd.f32 %v1100_v9, %v405_v58  ;;  %v411_v2 = vand.u32 2147483647, %v406_v43  ;;  %v403_v10 = vadd.f32 %v398_v47, %v381_v50 }
  0x7c   : > { %v412_v11 = vand.u32 2147483647, %v407_v48  ;;  %v413_v12 = vand.u32 2147483647, %v408_v51  ;;  %v414_v16 = vand.u32 2147483647, %v409_v55  ;;  %v404_v25 = vadd.f32 %v399_v52, %v382_v57 }
  0x7d   : > { %v415_v26 = vand.u32 2147483647, %v410_v1  ;;  %v417_v27 = vmul.f32 %v416_v62, %v411_v2  ;;  %v427_v61 = vstv %s1239_s8  ;;  %v438_v18 = vstv %s1243_s17  ;;  %s609_s8 = scalar_lea.sflag [#allocation4], %s1080_s16  ;;  %s616_s17 = smul.u32 (%p1411_p6), 5, %s977_s13 }
  0x7e   : > { %v418_v63 = vmul.f32 %v416_v62, %v412_v11  ;;  %v419_v0 = vmul.f32 %v416_v62, %v413_v12  ;;  %v420_v3 = vmul.f32 %v416_v62, %v414_v16  ;;  %v428_v4 = vadd.f32 %v1092_v5, %v427_v61 }
  0x7f   : > { %v421_v13 = vmul.f32 %v416_v62, %v415_v26  ;;  %v429_v14 = vadd.f32 %v1094_v6, %v427_v61  ;;  %v430_v17 = vadd.f32 %v1096_v7, %v427_v61  ;;  %v422_v28 = vadd.f32 %v417_v27, %v400_v60 }
  0x80   : > { %v423_v29 = vadd.f32 %v418_v63, %v401_v56  ;;  %v424_v30 = vadd.f32 %v419_v0, %v402_v59  ;;  %v431_v33 = vadd.f32 %v1098_v8, %v427_v61  ;;  %v425_v34 = vadd.f32 %v420_v3, %v403_v10 }
  0x81   : > { %v432_v37 = vadd.f32 %v1100_v9, %v427_v61  ;;  %v433_v38 = vand.u32 2147483647, %v428_v4  ;;  %v434_v41 = vand.u32 2147483647, %v429_v14  ;;  %v426_v42 = vadd.f32 %v421_v13, %v404_v25 }
  0x82   : > { %v435_v31 = vand.u32 2147483647, %v430_v17  ;;  %v436_v32 = vand.u32 2147483647, %v431_v33  ;;  %v449_v35 = vstv %s1249_s24  ;;  %v460_v57 = vstv %s1254_s25  ;;  %s617_s24 = ssub.s32 (%p1411_p6), 9, %s616_s17 }
  0x83   : > { %v437_v15 = vand.u32 2147483647, %v432_v37  ;;  %v439_v24 = vmul.f32 %v438_v18, %v433_v38  ;;  %v440_v36 = vmul.f32 %v438_v18, %v434_v41  ;;  %v450_v45 = vadd.f32 %v1092_v5, %v449_v35  ;;  %p618_p11 = scmp.lt.s32.totalorder (%p1411_p6), %s617_s24, 5 }
  0x84   : > { %v441_v39 = vmul.f32 %v438_v18, %v435_v31  ;;  %v442_v46 = vmul.f32 %v438_v18, %v436_v32  ;;  %v451_v49 = vadd.f32 %v1094_v6, %v449_v35  ;;  %v452_v50 = vadd.f32 %v1096_v7, %v449_v35 }
  0x85   : > { %v443_v53 = vmul.f32 %v438_v18, %v437_v15  ;;  %v444_v54 = vadd.f32 %v439_v24, %v422_v28  ;;  %v453_v19 = vadd.f32 %v1098_v8, %v449_v35  ;;  %v445_v20 = vadd.f32 %v440_v36, %v423_v29 }
  0x86   : > { %v446_v21 = vadd.f32 %v441_v39, %v424_v30  ;;  %v454_v58 = vadd.f32 %v1100_v9, %v449_v35  ;;  %v455_v22 = vand.u32 2147483647, %v450_v45  ;;  %v447_v23 = vadd.f32 %v442_v46, %v425_v34 }
  0x87   : > { %v456_v40 = vand.u32 2147483647, %v451_v49  ;;  %v457_v43 = vand.u32 2147483647, %v452_v50  ;;  %v458_v44 = vand.u32 2147483647, %v453_v19  ;;  %v448_v47 = vadd.f32 %v443_v53, %v426_v42 }
  0x88   : > { %v459_v48 = vand.u32 2147483647, %v454_v58  ;;  %v461_v51 = vmul.f32 %v460_v57, %v455_v22  ;;  %v471_v52 = vstv %s1261_s20  ;;  %v482_v10 = vstv %s1265_s26 }
  0x89   : > { %v462_v60 = vmul.f32 %v460_v57, %v456_v40  ;;  %v463_v55 = vmul.f32 %v460_v57, %v457_v43  ;;  %v464_v62 = vmul.f32 %v460_v57, %v458_v44  ;;  %v472_v56 = vadd.f32 %v1092_v5, %v471_v52 }
  0x8a   : > { %v465_v59 = vmul.f32 %v460_v57, %v459_v48  ;;  %v473_v1 = vadd.f32 %v1094_v6, %v471_v52  ;;  %v474_v2 = vadd.f32 %v1096_v7, %v471_v52  ;;  %v466_v11 = vadd.f32 %v461_v51, %v444_v54 }
  0x8b   : > { %v467_v12 = vadd.f32 %v462_v60, %v445_v20  ;;  %v468_v16 = vadd.f32 %v463_v55, %v446_v21  ;;  %v475_v25 = vadd.f32 %v1098_v8, %v471_v52  ;;  %v469_v26 = vadd.f32 %v464_v62, %v447_v23 }
  0x8c   : > { %v476_v27 = vadd.f32 %v1100_v9, %v471_v52  ;;  %v477_v61 = vand.u32 2147483647, %v472_v56  ;;  %v478_v63 = vand.u32 2147483647, %v473_v1  ;;  %v470_v0 = vadd.f32 %v465_v59, %v448_v47 }
  0x8d   : > { %v479_v3 = vand.u32 2147483647, %v474_v2  ;;  %v480_v4 = vand.u32 2147483647, %v475_v25  ;;  %v493_v13 = vstv %s1271_s27  ;;  %v504_v42 = vstv %s1276_s28 }
  0x8e   : > { %v481_v14 = vand.u32 2147483647, %v476_v27  ;;  %v483_v17 = vmul.f32 %v482_v10, %v477_v61  ;;  %v484_v18 = vmul.f32 %v482_v10, %v478_v63  ;;  %v494_v28 = vadd.f32 %v1092_v5, %v493_v13 }
  0x8f   : > { %v485_v29 = vmul.f32 %v482_v10, %v479_v3  ;;  %v486_v30 = vmul.f32 %v482_v10, %v480_v4  ;;  %v495_v33 = vadd.f32 %v1094_v6, %v493_v13  ;;  %v496_v34 = vadd.f32 %v1096_v7, %v493_v13 }
  0x90   : > { %v487_v37 = vmul.f32 %v482_v10, %v481_v14  ;;  %v488_v38 = vadd.f32 %v483_v17, %v466_v11  ;;  %v497_v41 = vadd.f32 %v1098_v8, %v493_v13  ;;  %v489_v31 = vadd.f32 %v484_v18, %v467_v12 }
  0x91   : > { %v490_v32 = vadd.f32 %v485_v29, %v468_v16  ;;  %v498_v35 = vadd.f32 %v1100_v9, %v493_v13  ;;  %v499_v15 = vand.u32 2147483647, %v494_v28  ;;  %v491_v24 = vadd.f32 %v486_v30, %v469_v26 }
  0x92   : > { %v500_v36 = vand.u32 2147483647, %v495_v33  ;;  %v501_v45 = vand.u32 2147483647, %v496_v34  ;;  %v502_v39 = vand.u32 2147483647, %v497_v41  ;;  %v492_v46 = vadd.f32 %v487_v37, %v470_v0 }
  0x93   : > { %v503_v49 = vand.u32 2147483647, %v498_v35  ;;  %v505_v50 = vmul.f32 %v504_v42, %v499_v15  ;;  %v515_v53 = vstv %s1283_s29  ;;  %v526_v23 = vstv %s1287_s30 }
  0x94   : > { %v506_v54 = vmul.f32 %v504_v42, %v500_v36  ;;  %v507_v19 = vmul.f32 %v504_v42, %v501_v45  ;;  %v508_v57 = vmul.f32 %v504_v42, %v502_v39  ;;  %v516_v20 = vadd.f32 %v1092_v5, %v515_v53 }
  0x95   : > { %v509_v21 = vmul.f32 %v504_v42, %v503_v49  ;;  %v517_v58 = vadd.f32 %v1094_v6, %v515_v53  ;;  %v518_v22 = vadd.f32 %v1096_v7, %v515_v53  ;;  %v510_v40 = vadd.f32 %v505_v50, %v488_v38 }
  0x96   : > { %v511_v43 = vadd.f32 %v506_v54, %v489_v31  ;;  %v512_v44 = vadd.f32 %v507_v19, %v490_v32  ;;  %v519_v47 = vadd.f32 %v1098_v8, %v515_v53  ;;  %v513_v48 = vadd.f32 %v508_v57, %v491_v24 }
  0x97   : > { %v520_v51 = vadd.f32 %v1100_v9, %v515_v53  ;;  %v521_v52 = vand.u32 2147483647, %v516_v20  ;;  %v522_v60 = vand.u32 2147483647, %v517_v58  ;;  %v514_v55 = vadd.f32 %v509_v21, %v492_v46 }
  0x98   : > { %v523_v62 = vand.u32 2147483647, %v518_v22  ;;  %v524_v56 = vand.u32 2147483647, %v519_v47  ;;  %v537_v59 = vstv %s1293_s4  ;;  %v548_v0 = vstv %s1298_s6 }
  0x99   : > { %v525_v1 = vand.u32 2147483647, %v520_v51  ;;  %v527_v2 = vmul.f32 %v526_v23, %v521_v52  ;;  %v528_v10 = vmul.f32 %v526_v23, %v522_v60  ;;  %v538_v11 = vadd.f32 %v1092_v5, %v537_v59 }
  0x9a   : > { %v529_v12 = vmul.f32 %v526_v23, %v523_v62  ;;  %v530_v16 = vmul.f32 %v526_v23, %v524_v56  ;;  %v539_v25 = vadd.f32 %v1094_v6, %v537_v59  ;;  %v540_v26 = vadd.f32 %v1096_v7, %v537_v59 }
  0x9b   : > { %v531_v27 = vmul.f32 %v526_v23, %v525_v1  ;;  %v532_v61 = vadd.f32 %v527_v2, %v510_v40  ;;  %v541_v63 = vadd.f32 %v1098_v8, %v537_v59  ;;  %v533_v3 = vadd.f32 %v528_v10, %v511_v43 }
  0x9c   : > { %v534_v4 = vadd.f32 %v529_v12, %v512_v44  ;;  %v542_v13 = vadd.f32 %v1100_v9, %v537_v59  ;;  %v543_v14 = vand.u32 2147483647, %v538_v11  ;;  %v535_v17 = vadd.f32 %v530_v16, %v513_v48 }
  0x9d   : > { %v544_v18 = vand.u32 2147483647, %v539_v25  ;;  %v545_v28 = vand.u32 2147483647, %v540_v26  ;;  %v546_v29 = vand.u32 2147483647, %v541_v63  ;;  %v536_v30 = vadd.f32 %v531_v27, %v514_v55 }
  0x9e   : > { %v547_v33 = vand.u32 2147483647, %v542_v13  ;;  %v549_v34 = vmul.f32 %v548_v0, %v543_v14  ;;  %v559_v37 = vstv %s1305_s7  ;;  %v570_v24 = vstv %s1309_s14 }
  0x9f   : > { %v550_v38 = vmul.f32 %v548_v0, %v544_v18  ;;  %v551_v41 = vmul.f32 %v548_v0, %v545_v28  ;;  %v552_v42 = vmul.f32 %v548_v0, %v546_v29  ;;  %v560_v31 = vadd.f32 %v1092_v5, %v559_v37 }
  0xa0   : > { %v553_v32 = vmul.f32 %v548_v0, %v547_v33  ;;  %v561_v35 = vadd.f32 %v1094_v6, %v559_v37  ;;  %v562_v15 = vadd.f32 %v1096_v7, %v559_v37  ;;  %v554_v36 = vadd.f32 %v549_v34, %v532_v61 }
  0xa1   : > { %v555_v45 = vadd.f32 %v550_v38, %v533_v3  ;;  %v556_v39 = vadd.f32 %v551_v41, %v534_v4  ;;  %v563_v46 = vadd.f32 %v1098_v8, %v559_v37  ;;  %v557_v49 = vadd.f32 %v552_v42, %v535_v17 }
  0xa2   : > { %v564_v50 = vadd.f32 %v1100_v9, %v559_v37  ;;  %v565_v53 = vand.u32 2147483647, %v560_v31  ;;  %v566_v54 = vand.u32 2147483647, %v561_v35  ;;  %v558_v19 = vadd.f32 %v553_v32, %v536_v30 }
  0xa3   : > { %v567_v57 = vand.u32 2147483647, %v562_v15  ;;  %v568_v20 = vand.u32 2147483647, %v563_v46  ;;  %v581_v21 = vstv %s1315_s3  ;;  %v592_v55 = vstv %s1320_s5 }
  0xa4   : > { %v569_v58 = vand.u32 2147483647, %v564_v50  ;;  %v571_v22 = vmul.f32 %v570_v24, %v565_v53  ;;  %v572_v23 = vmul.f32 %v570_v24, %v566_v54  ;;  %v582_v40 = vadd.f32 %v1092_v5, %v581_v21 }
  0xa5   : > { %v573_v43 = vmul.f32 %v570_v24, %v567_v57  ;;  %v574_v44 = vmul.f32 %v570_v24, %v568_v20  ;;  %v583_v47 = vadd.f32 %v1094_v6, %v581_v21  ;;  %v584_v48 = vadd.f32 %v1096_v7, %v581_v21 }
  0xa6   : > { %v575_v51 = vmul.f32 %v570_v24, %v569_v58  ;;  %v576_v52 = vadd.f32 %v571_v22, %v554_v36  ;;  %v585_v60 = vadd.f32 %v1098_v8, %v581_v21  ;;  %v577_v62 = vadd.f32 %v572_v23, %v555_v45 }
  0xa7   : > { %v578_v56 = vadd.f32 %v573_v43, %v556_v39  ;;  %v586_v59 = vadd.f32 %v1100_v9, %v581_v21  ;;  %v587_v1 = vand.u32 2147483647, %v582_v40  ;;  %v579_v2 = vadd.f32 %v574_v44, %v557_v49 }
  0xa8   : > { %v588_v10 = vand.u32 2147483647, %v583_v47  ;;  %v589_v5 = vand.u32 2147483647, %v584_v48  ;;  %v590_v11 = vand.u32 2147483647, %v585_v60  ;;  %v580_v12 = vadd.f32 %v575_v51, %v558_v19 }
  0xa9   : > { %v591_v16 = vand.u32 2147483647, %v586_v59  ;;  %v593_v6 = vmul.f32 %v592_v55, %v587_v1 }
  0xaa   : > { %v594_v7 = vmul.f32 %v592_v55, %v588_v10  ;;  %v595_v25 = vmul.f32 %v592_v55, %v589_v5  ;;  %v596_v26 = vmul.f32 %v592_v55, %v590_v11 }
  0xab   : > { %v597_v27 = vmul.f32 %v592_v55, %v591_v16  ;;  %v598_v8 = vadd.f32 %v593_v6, %v576_v52  ;;  %615 = sbr.rel (!%p1411_p6) target bundleno = 203 (0xcb), region = 40 }
  0xac   : > { %v599_v61 = vadd.f32 %v594_v7, %v577_v62  ;;  %v600_v63 = vadd.f32 %v595_v25, %v578_v56  ;;  %v601_v0 = vadd.f32 %v596_v26, %v579_v2 }
  0xad   : > { %v602_v3 = vadd.f32 %v597_v27, %v580_v12  ;;  %603 = vst [vmem:[%s179_s23] sm:$0xff] %v598_v8 }
  0xae   : > { %604 = vst [vmem:[%s179_s23 + $0x8] sm:$0xff] %v599_v61  ;;  %605 = vst [vmem:[%s179_s23 + $0x10] sm:$0xff] %v600_v63 }
  0xaf   : > { %606 = vst [vmem:[%s179_s23 + $0x18] sm:$0xff] %v601_v0  ;;  %607 = vst [vmem:[%s179_s23 + $0x20] sm:$0xff] %v602_v3 }
  0xb0   : > { %s1421_s24 = smov (!%p618_p11, %s617_s24), 5 }
  0xb1   : > { %s1342_s25 = sshll.u32 %s1421_s24, 7 }
  0xb2   : > { %s622_s20 = ssub.s32 640, %s1342_s25 }
  0xb3   : > { %623 = vsyncadd %s609_s8, %s622_s20  ;;  %p763_p12 = scmp.ne.s32.totalorder %s1342_s25, 0  ;;  %s770_s19 = smul.u32 640, %s977_s13 }
  0xb4   : > { %s628_s21 = sshll.u32 %s179_s23, 4  ;;  %s938_s30 = smov [#allocation7]   ;;  %s1354_s21 = int_to_ptr.vmem [resolvable:$true] %s628_s21 }
  0xb5   : > { %s1352_s28 = scalar_lea.hbm %s1401_s2, %s770_s19  ;;  %s864_s29 = scalar_lea.vmem %s1354_s21, %s1342_s25 }
  0xb6   : > { %p865_p13 = scmp.ne.s32.totalorder %s1354_s21, %s864_s29  ;;  %s868_s4 = sshll.u32 %s938_s30, 4  ;;  %s869_s4 = int_to_ptr.vmem [resolvable:$false] %s868_s4 }
  0xb7   : > { %s870_s13 = scalar_lea.vmem %s869_s4, 1280  ;;  %p871_p1 = scmp.lt.s32.totalorder %s1354_s21, %s869_s4 }
  0xb8   : > { %p866_p0 = pnand %p865_p13, %p763_p12  ;;  %p872_p2 = scmp.lt.s32.totalorder %s870_s13, %s864_s29 }
  0xba   : > { %p867_p5 = pneg %p866_p0  ;;  %p873_p3 = por %p872_p2, %p871_p1 }
  0xbc   : > { %p874_p7 = pnand %p873_p3, %p867_p5 }
  0xbe   : > { %877 = shalt.err (!%p874_p7)
}
  0xbf   : > { %s878_s6 = scalar_lea.hbm %s1352_s28, %s1342_s25  ;;  %s882_s3 = scalar_lea.hbm %s1401_s2, 1152 }
  0xc0   : > { %p879_p8 = scmp.ne.s32.totalorder %s1352_s28, %s878_s6  ;;  %p883_p4 = scmp.lt.s32.totalorder %s1352_s28, %s1401_s2 }
  0xc1   : > { %p884_p6 = scmp.lt.s32.totalorder %s882_s3, %s878_s6 }
  0xc2   : > { %p880_p10 = pnand %p879_p8, %p763_p12 }
  0xc3   : > { %p885_p11 = por %p884_p6, %p883_p4 }
  0xc4   : > { %p881_p9 = pneg %p880_p10 }
  0xc6   : > { %p886_p13 = pnand %p885_p11, %p881_p9 }
  0xc8   : > { %889 = shalt.err (!%p886_p13)
}
  0xc9   : > { %s939_s17 = smov 128   ;;  %s940_s24 = smov 8  }
  0xca   : > { %634 = dma.vmem_to_hbm [thread:$0]  (%p763_p12), %s1354_s21, %s1342_s25, %s1352_s28, %s609_s8, %s939_s17, %s939_s17, %s940_s24  }
  0xcb PF: > { %s643_s20 = sand.u32 1, %s920_s9   ;;  %p1412_p0 = scmp.ne.s32.totalorder %s1407_s22, 0 }
  0xcc   : > { %p1413_p5 = scmp.ge.s32.totalorder %s932_s12, 2  ;;  %s644_s19 = scalar_lea.sflag [#allocation4], %s643_s20 }
  0xce   : > { %p784_p1 = pnand %p1413_p5, %p1412_p0 }
  0xd0   : > { %p785_p2 = pneg %p784_p1 }
  0xd2   : > { %915 = dma.done.wait (%p785_p2), %s644_s19, 640  }
  0xd3   : > { %917 = vsyncadd (%p785_p2), %s644_s19, 4294966656  ;;  %p16_p3 = scmp.ge.s32.totalorder %s981_s15, 4   ;;  %s1414_s9 = smov %s924_s10 }
  0xd4   : > { %s1415_s10 = smov %s928_s11  ;;  %s1416_s11 = smov %s993_s18 }
  0xd5   : > { %s1417_s12 = smov %s981_s15  ;;  %18 = sbr.rel (!%p16_p3) target bundleno = 6 (0x6), region = 78 }
  0xda   :  { %649 = vsyncpa [#allocation3], 1 }
  0xdb   :  { %651 = vsyncpa [#allocation3 + $0x1], 1 }
  0xdc   :  { %652 = vsyncpa [#allocation4], 1 }
  0xdd   :  { %654 = vsyncpa [#allocation4 + $0x1], 1 }
  0xde   :  { %655 = vsyncpa [#allocation5], 1 }
  0xdf   :  { %657 = vsyncpa [#allocation5 + $0x1], 1 }

</bundles_post_ra>
